<compile_context>
chip_gen: v6e
topology: v6e:2x2x1
jax: 0.10.0
libtpu: 0.0.40
codegen_flags: <defaults>
</compile_context>

<pallas_src>
import functools

import jax
import jax.numpy as jnp
from jax.experimental import pallas as pl
from jax.experimental.pallas import tpu as pltpu

_PROJ = 16   # fused projection width: [x2(7), pad(1), t(7), pad(1)]
_SUB = 8     # f32 sublanes per vreg


def _round_up(v, m):
    return ((v + m - 1) // m) * m


# --------------------------------------------------------------------------
# Kernel A: lane-dense node sum (one resident (8, lane_w) accumulator per
# (graph, node-split); reduction axis innermost).
# --------------------------------------------------------------------------
def _node_sum_kernel(x_ref, o_ref, *, rows_valid, tile_rows, tiles_per_split,
                     need_mask):
    """x_ref: (tile_rows, lane_w) tile; o_ref: (8, lane_w) resident output."""
    split = pl.program_id(1)
    step = pl.program_id(2)

    @pl.when(step == 0)
    def _init():
        o_ref[...] = jnp.zeros_like(o_ref)

    lane_w = x_ref.shape[-1]

    def _accumulate(v):
        # vreg-wise accumulation: plain VPU adds of (8, lane_w) row groups;
        # the cross-sublane/lane fold happens only in the finalize matmul.
        o_ref[...] += jnp.sum(v.reshape(tile_rows // _SUB, _SUB, lane_w), axis=0)

    if need_mask:
        row0 = (split * tiles_per_split + step) * tile_rows

        @pl.when(row0 + tile_rows <= rows_valid)
        def _full_tile():
            _accumulate(x_ref[...])

        @pl.when(row0 + tile_rows > rows_valid)
        def _tail_tile():
            # Out-of-range rows of a partial block hold unspecified data:
            # zero them explicitly before accumulating.
            rows = jax.lax.broadcasted_iota(jnp.int32, x_ref.shape, 0) + row0
            _accumulate(jnp.where(rows < rows_valid, x_ref[...], 0.0))
    else:
        _accumulate(x_ref[...])


# --------------------------------------------------------------------------
# Kernel B: batched head / finalize for all graphs at once.
# --------------------------------------------------------------------------
def _head_kernel(s_ref, wbig_ref, bcat_ref, w2cat_ref, b2_ref, o_ref):
    """(TB, W) raw node sums -> (TB, C) sigmoid outputs."""
    p = jnp.dot(s_ref[...], wbig_ref[...],
                preferred_element_type=jnp.float32) + bcat_ref[...]      # (TB, 16)
    x2 = p[:, 0:8]        # lanes 0..6 = mlp1(mean), lane 7 = 0
    t = p[:, 8:16]        # lanes 0..6 = mlp12(mean), lane 7 = 0
    h = jnp.maximum(
        jnp.concatenate([x2 * jnp.cos(t), x2 * jnp.sin(t)], axis=1), 0.0)  # (TB, 16)
    out = jnp.dot(h, w2cat_ref[...],
                  preferred_element_type=jnp.float32) + b2_ref[...]       # (TB, C)
    o_ref[...] = jax.nn.sigmoid(out)


# --------------------------------------------------------------------------
# Wrappers
# --------------------------------------------------------------------------
def graph_channel_forward_batched(x, w1, b1, w12, b12, w2, b2, *,
                                  tile_rows=4096, node_splits=None):
    """x: (B, N, C) float32; weights in PyTorch Linear convention (out, in).

    Returns (B, C) float32: one Graph_channel forward per graph.
    """
    x = jnp.asarray(x, jnp.float32)
    B, N, C = x.shape
    assert N >= 1 and C >= 1

    # ---- lane-dense, pad-free view: (B, N, C) -> (B, R, k*C), k | N --------
    k_max = max(1, 128 // C) if C <= 128 else 1
    k = 1
    for cand in range(min(k_max, N), 0, -1):
        if N % cand == 0:
            k = cand
            break
    lane_w = k * C
    R = N // k
    xl = x.reshape(B, R, lane_w)          # contiguous regroup -> no HBM copy

    # ---- node-row tiling, sized in bytes (lane padding to 128 accounted) ---
    tr = _round_up(min(tile_rows, R), _SUB)
    n_row_blocks = pl.cdiv(R, tr)

    if node_splits is None:
        node_splits = 2 if (B == 1 and n_row_blocks >= 2) else 1
    nsplit = max(1, int(node_splits))
    tps = pl.cdiv(n_row_blocks, nsplit)                  # tiles per split
    need_mask = (nsplit * tps * tr) != R                 # any padded tail rows?

    # VMEM footprint: x block stored lane-padded to 128 lanes, double-buffered.
    x_block_vmem = tr * max(lane_w, 128) * 4
    vmem_limit = int(min(64 << 20, max(16 << 20, 4 * x_block_vmem)))

    sum_kernel = functools.partial(
        _node_sum_kernel, rows_valid=R, tile_rows=tr,
        tiles_per_split=tps, need_mask=need_mask)

    part_sums = pl.pallas_call(
        sum_kernel,
        out_shape=jax.ShapeDtypeStruct((B * nsplit, _SUB, lane_w), jnp.float32),
        grid=(B, nsplit, tps),
        in_specs=[pl.BlockSpec(
            (None, tr, lane_w),
            # Clamp the block index for (clamped-to-last) overhanging tiles;
            # the in-kernel mask zeroes their contribution exactly.
            lambda b, s, n: (b, jnp.minimum(s * tps + n, n_row_blocks - 1), 0))],
        out_specs=pl.BlockSpec(
            (None, _SUB, lane_w),
            lambda b, s, n: (b * nsplit + s, 0, 0)),
        compiler_params=pltpu.CompilerParams(
            dimension_semantics=("parallel", "parallel", "arbitrary"),
            vmem_limit_bytes=vmem_limit),
    )(xl)

    # Combine node splits (tiny: B * nsplit * 8 * lane_w elements).
    W = _SUB * lane_w
    sums = part_sums.reshape(B, nsplit, W).sum(axis=1)          # (B, W)

    # ---- fused weights (1/N and sublane/lane->channel fold baked in) -------
    inv_n = jnp.float32(1.0 / N)
    wcat = jnp.zeros((C, _PROJ), jnp.float32)
    wcat = wcat.at[:, 0:7].set(jnp.asarray(w1, jnp.float32).T * inv_n)
    wcat = wcat.at[:, 8:15].set(jnp.asarray(w12, jnp.float32).T * inv_n)
    # Flat index f of the (8, lane_w) accumulator maps to channel f % C,
    # so tiling wcat along rows folds the 128-lane sum back to channels.
    wbig = jnp.tile(wcat, (W // C, 1))                           # (W, 16)

    bcat = jnp.zeros((1, _PROJ), jnp.float32)
    bcat = bcat.at[0, 0:7].set(jnp.asarray(b1, jnp.float32))
    bcat = bcat.at[0, 8:15].set(jnp.asarray(b12, jnp.float32))

    w2t = jnp.asarray(w2, jnp.float32).T                         # (14, C)
    w2cat = jnp.zeros((_PROJ, C), jnp.float32)
    w2cat = w2cat.at[0:7, :].set(w2t[0:7, :])
    w2cat = w2cat.at[8:15, :].set(w2t[7:14, :])
    b2_2d = jnp.asarray(b2, jnp.float32).reshape(1, C)

    # ---- batched head: one pallas_call for all graphs ----------------------
    tb = min(B, 512)
    out = pl.pallas_call(
        _head_kernel,
        out_shape=jax.ShapeDtypeStruct((B, C), jnp.float32),
        grid=(pl.cdiv(B, tb),),
        in_specs=[
            pl.BlockSpec((tb, W), lambda i: (i, 0)),
            pl.BlockSpec((W, _PROJ), lambda i: (0, 0)),
            pl.BlockSpec((1, _PROJ), lambda i: (0, 0)),
            pl.BlockSpec((_PROJ, C), lambda i: (0, 0)),
            pl.BlockSpec((1, C), lambda i: (0, 0)),
        ],
        out_specs=pl.BlockSpec((tb, C), lambda i: (i, 0)),
        compiler_params=pltpu.CompilerParams(
            dimension_semantics=("parallel",)),
    )(sums, wbig, bcat, w2cat, b2_2d)

    return out


def graph_channel_forward(x, w1, b1, w12, b12, w2, b2, **kw):
    """Single graph: x (N, C) -> (C,), matching the PyTorch module."""
    return graph_channel_forward_batched(x[None], w1, b1, w12, b12, w2, b2,
                                         **kw)[0]


def graph_channel_ref(x, w1, b1, w12, b12, w2, b2):
    """Pure-JAX reference mirroring the PyTorch forward exactly."""
    hp = jax.lax.Precision.HIGHEST
    m = jnp.mean(x, axis=0)
    x2 = jnp.dot(m, w1.T, precision=hp) + b1
    t = jnp.dot(m, w12.T, precision=hp) + b12
    h = jax.nn.relu(jnp.concatenate([x2 * jnp.cos(t), x2 * jnp.sin(t)]))
    return jax.nn.sigmoid(jnp.dot(h, w2.T, precision=hp) + b2)


if __name__ == "__main__":
    channel = 16
    key = jax.random.PRNGKey(0)
    kx, k1w, k1b, k12w, k12b, k2w, k2b = jax.random.split(key, 7)

    w1 = jax.random.normal(k1w, (7, channel), dtype=jnp.float32) * 0.25
    b1 = jax.random.normal(k1b, (7,), dtype=jnp.float32) * 0.1
    w12 = jax.random.normal(k12w, (7, channel), dtype=jnp.float32) * 0.25
    b12 = jax.random.normal(k12b, (7,), dtype=jnp.float32) * 0.1
    w2 = jax.random.normal(k2w, (channel, 14), dtype=jnp.float32) * 0.25
    b2 = jax.random.normal(k2b, (channel,), dtype=jnp.float32) * 0.1

    def check(xb, **kw):
        out = graph_channel_forward_batched(xb, w1, b1, w12, b12, w2, b2, **kw)
        out = jax.block_until_ready(out)
        ref = jax.vmap(
            lambda xi: graph_channel_ref(xi, w1, b1, w12, b12, w2, b2))(xb)
        assert out.shape == (xb.shape[0], channel), out.shape
        assert jnp.allclose(out, ref, atol=1e-4, rtol=1e-4), (out, ref)

    # 1) Single graph, N % 8 == 0: zero-copy 128-lane path, multi-tile
    #    reduction, node-axis split across two parallel grid entries (both
    #    v7x TensorCores), tail-tile masking (25 rows over 4 tiles of 8).
    x1 = jax.random.normal(kx, (1, 200, channel), dtype=jnp.float32)
    check(x1, tile_rows=8)
    out_single = graph_channel_forward(x1[0], w1, b1, w12, b12, w2, b2,
                                       tile_rows=8)
    out_single = jax.block_until_ready(out_single)
    ref_single = graph_channel_ref(x1[0], w1, b1, w12, b12, w2, b2)
    assert out_single.shape == (channel,)
    assert jnp.allclose(out_single, ref_single, atol=1e-4, rtol=1e-4), (
        out_single, ref_single)

    # 2) Batched graphs, N = 20 (k = 5 lane packing), batched head kernel.
    x2v = jax.random.normal(jax.random.fold_in(kx, 1), (4, 20, channel),
                            dtype=jnp.float32)
    check(x2v, tile_rows=8)

    # 3) Prime N -> k = 1 fallback (still pad-free, masked tail), default tile.
    x3 = jax.random.normal(jax.random.fold_in(kx, 2), (3, 37, channel),
                           dtype=jnp.float32)
    check(x3)

    print("KERNEL_OK")
</pallas_src>

<mosaic_0001>
module attributes {stable_mosaic.version = 11 : i64} {
  func.func @_node_sum_kernel(%arg0: i32, %arg1: i32, %arg2: i32, %arg3: memref<1x8x128xf32, #tpu.memory_space<vmem>>, %arg4: memref<1x8x128xf32, #tpu.memory_space<vmem>>) attributes {dimension_semantics = [#tpu.dimension_semantics<parallel>, #tpu.dimension_semantics<parallel>, #tpu.dimension_semantics<arbitrary>], iteration_bounds = array<i64: 1, 2, 2>, scalar_prefetch = 0 : i64, scratch_operands = 0 : i64, tpu.core_type = #tpu.core_type<tc>, window_params = [{transform_indices = @transform_0, window_bounds = array<i64: 1, 8, 128>}, {transform_indices = @transform_1, window_bounds = array<i64: 1, 8, 128>}]} {
    %c0_i32 = arith.constant 0 : i32
    %0 = arith.cmpi eq, %arg2, %c0_i32 : i32
    %1 = arith.extui %0 : i1 to i32
    %c0_i32_0 = arith.constant 0 : i32
    %2 = arith.cmpi ne, %1, %c0_i32_0 : i32
    scf.if %2 {
      %cst = arith.constant 0.000000e+00 : f32
      %14 = vector.broadcast %cst : f32 to vector<8x128xf32>
      %c0 = arith.constant 0 : index
      %c0_6 = arith.constant 0 : index
      %c0_7 = arith.constant 0 : index
      %15 = vector.load %arg4[%c0, %c0_6, %c0_7] : memref<1x8x128xf32, #tpu.memory_space<vmem>>, vector<1x8x128xf32>
      %16 = vector.shape_cast %15 : vector<1x8x128xf32> to vector<8x128xf32>
      %17 = vector.shape_cast %14 : vector<8x128xf32> to vector<1x8x128xf32>
      tpu.vector_store %arg4[%c0, %c0_6, %c0_7], %17 {strides = array<i32>} : memref<1x8x128xf32, #tpu.memory_space<vmem>>, vector<1x8x128xf32>,
    } else {
    }
    %c2_i32 = arith.constant 2 : i32
    %3 = arith.muli %arg1, %c2_i32 : i32
    %4 = arith.addi %3, %arg2 : i32
    %c8_i32 = arith.constant 8 : i32
    %5 = arith.muli %4, %c8_i32 : i32
    %c8_i32_1 = arith.constant 8 : i32
    %6 = arith.addi %5, %c8_i32_1 : i32
    %c25_i32 = arith.constant 25 : i32
    %7 = arith.cmpi sle, %6, %c25_i32 : i32
    %8 = arith.extui %7 : i1 to i32
    %c0_i32_2 = arith.constant 0 : i32
    %9 = arith.cmpi ne, %8, %c0_i32_2 : i32
    scf.if %9 {
      %c0 = arith.constant 0 : index
      %c0_6 = arith.constant 0 : index
      %c0_7 = arith.constant 0 : index
      %14 = vector.load %arg3[%c0, %c0_6, %c0_7] : memref<1x8x128xf32, #tpu.memory_space<vmem>>, vector<1x8x128xf32>
      %15 = vector.shape_cast %14 : vector<1x8x128xf32> to vector<8x128xf32>
      %c0_8 = arith.constant 0 : index
      %c0_9 = arith.constant 0 : index
      %c0_10 = arith.constant 0 : index
      %16 = vector.load %arg4[%c0_8, %c0_9, %c0_10] : memref<1x8x128xf32, #tpu.memory_space<vmem>>, vector<1x8x128xf32>
      %17 = vector.shape_cast %16 : vector<1x8x128xf32> to vector<8x128xf32>
      %18 = vector.shape_cast %15 : vector<8x128xf32> to vector<1x8x128xf32>
      %cst = arith.constant dense<0.000000e+00> : vector<8x128xf32>
      %19 = vector.multi_reduction <add>, %18, %cst [0] : vector<1x8x128xf32> to vector<8x128xf32>
      %20 = arith.addf %17, %19 : vector<8x128xf32>
      %c0_11 = arith.constant 0 : index
      %c0_12 = arith.constant 0 : index
      %c0_13 = arith.constant 0 : index
      %21 = vector.load %arg4[%c0_11, %c0_12, %c0_13] : memref<1x8x128xf32, #tpu.memory_space<vmem>>, vector<1x8x128xf32>
      %22 = vector.shape_cast %21 : vector<1x8x128xf32> to vector<8x128xf32>
      %23 = vector.shape_cast %20 : vector<8x128xf32> to vector<1x8x128xf32>
      tpu.vector_store %arg4[%c0_11, %c0_12, %c0_13], %23 {strides = array<i32>} : memref<1x8x128xf32, #tpu.memory_space<vmem>>, vector<1x8x128xf32>,
    } else {
    }
    %c8_i32_3 = arith.constant 8 : i32
    %10 = arith.addi %5, %c8_i32_3 : i32
    %c25_i32_4 = arith.constant 25 : i32
    %11 = arith.cmpi sgt, %10, %c25_i32_4 : i32
    %12 = arith.extui %11 : i1 to i32
    %c0_i32_5 = arith.constant 0 : i32
    %13 = arith.cmpi ne, %12, %c0_i32_5 : i32
    scf.if %13 {
      %14 = tpu.iota {dimensions = array<i32: 0>} : vector<8x128xi32>
      %15 = vector.broadcast %5 : i32 to vector<8x128xi32>
      %16 = arith.addi %14, %15 : vector<8x128xi32>
      %c25_i32_6 = arith.constant 25 : i32
      %17 = vector.broadcast %c25_i32_6 : i32 to vector<8x128xi32>
      %18 = arith.cmpi slt, %16, %17 : vector<8x128xi32>
      %c0 = arith.constant 0 : index
      %c0_7 = arith.constant 0 : index
      %c0_8 = arith.constant 0 : index
      %19 = vector.load %arg3[%c0, %c0_7, %c0_8] : memref<1x8x128xf32, #tpu.memory_space<vmem>>, vector<1x8x128xf32>
      %20 = vector.shape_cast %19 : vector<1x8x128xf32> to vector<8x128xf32>
      %cst = arith.constant 0.000000e+00 : f32
      %21 = vector.broadcast %cst : f32 to vector<8x128xf32>
      %22 = arith.select %18, %20, %21 : vector<8x128xi1>, vector<8x128xf32>
      %c0_9 = arith.constant 0 : index
      %c0_10 = arith.constant 0 : index
      %c0_11 = arith.constant 0 : index
      %23 = vector.load %arg4[%c0_9, %c0_10, %c0_11] : memref<1x8x128xf32, #tpu.memory_space<vmem>>, vector<1x8x128xf32>
      %24 = vector.shape_cast %23 : vector<1x8x128xf32> to vector<8x128xf32>
      %25 = vector.shape_cast %22 : vector<8x128xf32> to vector<1x8x128xf32>
      %cst_12 = arith.constant dense<0.000000e+00> : vector<8x128xf32>
      %26 = vector.multi_reduction <add>, %25, %cst_12 [0] : vector<1x8x128xf32> to vector<8x128xf32>
      %27 = arith.addf %24, %26 : vector<8x128xf32>
      %c0_13 = arith.constant 0 : index
      %c0_14 = arith.constant 0 : index
      %c0_15 = arith.constant 0 : index
      %28 = vector.load %arg4[%c0_13, %c0_14, %c0_15] : memref<1x8x128xf32, #tpu.memory_space<vmem>>, vector<1x8x128xf32>
      %29 = vector.shape_cast %28 : vector<1x8x128xf32> to vector<8x128xf32>
      %30 = vector.shape_cast %27 : vector<8x128xf32> to vector<1x8x128xf32>
      tpu.vector_store %arg4[%c0_13, %c0_14, %c0_15], %30 {strides = array<i32>} : memref<1x8x128xf32, #tpu.memory_space<vmem>>, vector<1x8x128xf32>,
    } else {
    }
    return
  }
  func.func @transform_0(%arg0: i32, %arg1: i32, %arg2: i32) -> (i32, i32, i32) {
    %c2_i32 = arith.constant 2 : i32
    %0 = arith.muli %arg1, %c2_i32 : i32
    %1 = arith.addi %0, %arg2 : i32
    %c3_i32 = arith.constant 3 : i32
    %2 = arith.minsi %1, %c3_i32 : i32
    %c0_i32 = arith.constant 0 : i32
    %c0_i32_0 = arith.constant 0 : i32
    return %arg0, %2, %c0_i32 : i32, i32, i32
  }
  func.func @transform_1(%arg0: i32, %arg1: i32, %arg2: i32) -> (i32, i32, i32) {
    %c2_i32 = arith.constant 2 : i32
    %0 = arith.muli %arg0, %c2_i32 : i32
    %1 = arith.addi %0, %arg1 : i32
    %c0_i32 = arith.constant 0 : i32
    %c0_i32_0 = arith.constant 0 : i32
    %c0_i32_1 = arith.constant 0 : i32
    return %1, %c0_i32, %c0_i32_0 : i32, i32, i32
  }
}

</mosaic_0001>

<bundles_post_ra>
// kernel: tpu_custom_call.1
= control target key start
LH: loop header
LB: loop body
LE: loop exit
PB: predicated region body
PF: predicated region fallthrough
CT: control target
= control target key end

     0   :  { %6 = vsyncpa [#allocation3], 0  ;;  %s641_s0 = inlined_call_operand.vmem [shape: f32[1,25,128], index: 0, kind: input, shape index: {}]   ;;  %s642_s1 = inlined_call_operand.hbm [shape: f32[2,8,128], index: 1, kind: output, shape index: {}]  }
   0x1   :  { %8 = vsyncpa [#allocation3 + $0x1], 0  ;;  %s509_s6 = smov 0   ;;  %s511_s7 = smov 0  }
   0x2   :  { %s513_s8 = smov 0   ;;  %s515_s9 = smov 0  }
   0x3   :  { %s517_s10 = smov 0   ;;  %s519_s11 = smov 0  }
   0x4   :  { %s521_s12 = smov 0   ;;  %s523_s13 = smov 0  }
   0x5 LB: > { %s309_s14 = sadd.s32 4294967295, %s495_s13   ;;  %s310_s15 = sadd.s32 4294967294, %s495_s13   ;;  %s495_s13 = sphi %s523_s13, %s14_s13   ;;  %s491_s12 = sphi %s521_s12, %s651_s12   ;;  %s487_s11 = sphi %s519_s11, %s650_s11   ;;  %s483_s10 = sphi %s517_s10, %s649_s10   ;;  %s479_s9 = sphi %s515_s9, %s648_s9   ;;  %s475_s8 = sphi %s513_s8, %s647_s8   ;;  %s471_s7 = sphi %s511_s7, %s646_s7   ;;  %s467_s6 = sphi %s509_s6, %s645_s6  }
   0x6   : > { %s26_s16 = sadd.s32 1, %s487_s11  ;;  %s29_s17 = sadd.s32 1, %s491_s12 }
   0x7   : > { %p27_p0 = scmp.ge.s32.totalorder %s26_s16, 2  ;;  %p90_p1 = scmp.ne.s32.totalorder %s475_s8, %s471_s7 }
   0x8   : > { %p91_p2 = scmp.eq.s32.totalorder %s309_s14, 3  ;;  %p96_p4 = scmp.ne.s32.totalorder %s471_s7, %s467_s6 }
   0x9   : > { %s653_s16 = smov (%p27_p0, %s26_s16), 0  ;;  %s655_s17 = smov (!%p27_p0, %s29_s17), %s491_s12 }
   0xa   : > { %p558_p3 = por %p91_p2, %p90_p1  ;;  %p31_p5 = scmp.ge.s32.totalorder %s655_s17, 2 }
   0xb   : > { %p97_p6 = scmp.eq.s32.totalorder %s310_s15, 3  ;;  %p315_p7 = scmp.ge.s32.totalorder %s495_s13, 1 }
   0xc   : > { %p134_p8 = scmp.lt.s32.totalorder %s495_s13, 5  ;;  %s657_s17 = smov (%p31_p5, %s655_s17), 0 }
   0xd   : > { %p568_p9 = por %p97_p6, %p96_p4  ;;  %s77_s20 = ssub.s32 %s491_s12, %s657_s17 }
   0xe   : > { %p135_p10 = pnand %p315_p7, %p134_p8  ;;  %s80_s21 = sadd.s32 1, %s475_s8 }
   0xf   : > { %p78_p11 = scmp.eq.s32.totalorder %s77_s20, 0  ;;  %s158_s23 = sand.u32 (!%p135_p10), 1, %s471_s7  }
  0x10   : > { %138 = sbr.rel (%p135_p10) target bundleno = 84 (0x54), region = 24  ;;  %s317_s24 = sshll.u32 (!%p135_p10), %s483_s10, 1 }
  0x11   : > { %s576_s22 = scalar_select %p78_p11, %s475_s8, %s80_s21  }
  0x12   : > { %s316_s25 = sshll.u32 (!%p135_p10), %s158_s23, 3  ;;  %s162_s26 = sadd.s32 (!%p135_p10), %s479_s9, %s317_s24 }
  0x13   : > { %p163_p12 = scmp.lt.s32.totalorder (!%p135_p10), %s162_s26, 3  ;;  %s586_s3 = scalar_lea.vmem (!%p135_p10), [#allocation2], %s316_s25 }
  0x14   : > { %p322_p13 = scmp.ne.s32.totalorder (!%p135_p10), %s479_s9, 0 }
  0x15   : > { %s164_s27 = scalar_select %p163_p12, %s162_s26, 3 }
  0x16   : > { %182 = sbr.rel (%p322_p13) target bundleno = 29 (0x1d), region = 28 }
  0x17   : > { %s659_s27 = smov (!%p163_p12, %s164_s27), 3 }
  0x18   : > { %s321_s28 = sshll.u32 %s659_s27, 3 }
  0x19   : > { %s172_s2 = scalar_lea.vmem %s641_s0, %s321_s28 }
  0x1b   : > { %v497_v0 = vmov 0.0  }
  0x1c   : > { %183 = vst [vmem:[%s586_s3] sm:$0xff] %v497_v0 }
  0x1d PF: > { %s324_s4 = sshll.u32 %s162_s26, 3 }
  0x1e   : > { %s187_s5 = sadd.s32 8, %s324_s4 }
  0x1f   : > { %p325_p0 = scmp.gt.s32.totalorder %s187_s5, 25 }
  0x21   : > { %191 = sbr.rel (%p325_p0) target bundleno = 43 (0x2b), region = 32 }
  0x26   : > { %v192_v1 = vld [vmem:[%s172_s2] sm:$0xff] }
  0x27   : > { %v193_v2 = vld [vmem:[%s586_s3] sm:$0xff] }
  0x28   : > { %v195_v3 = vadd.f32 %v193_v2, %v192_v1 }
  0x2a   : > { %196 = vst [vmem:[%s586_s3] sm:$0xff] %v195_v3 }
  0x2b PF: > { %p326_p1 = scmp.le.s32.totalorder %s187_s5, 25 }
  0x2d   : > { %200 = sbr.rel (%p326_p1) target bundleno = 61 (0x3d), region = 36 }
  0x32   : > { %v201_v4 = vlaneseq  ;;  %v203_v5 = vstv %s324_s4  ;;  %v206_v8 = vld [vmem:[%s172_s2] sm:$0xff] }
  0x33   : > { %v208_v9 = vld [vmem:[%s586_s3] sm:$0xff] }
  0x34   : > { %v202_v6 = vshrl.u32 %v201_v4, 7 }
  0x36   : > { %v204_v7 = vadd.s32 %v203_v5, %v202_v6 }
  0x38   : > { %vm205_vm0 = vcmp.lt.s32.totalorder %v204_v7, 25 }
  0x39   : > { %v207_v10 = vsel %vm205_vm0, %v206_v8, 0.0 }
  0x3a   : > { %v210_v11 = vadd.f32 %v208_v9, %v207_v10 }
  0x3c   : > { %211 = vst [vmem:[%s586_s3] sm:$0xff] %v210_v11 }
  0x3d PF: > { %s328_s9 = sshll.u32 %s483_s10, 7  ;;  %s228_s21 = sshll.u32 %s586_s3, 4  ;;  %s229_s21 = int_to_ptr.vmem [resolvable:$true] %s228_s21 }
  0x3e   : > { %s226_s20 = scalar_lea.hbm %s642_s1, %s328_s9  ;;  %s213_s24 = scalar_lea.sflag [#allocation3], %s158_s23 }
  0x3f   : > { %s403_s25 = scalar_lea.vmem %s229_s21, 128  ;;  %s498_s26 = smov [#allocation2]  }
  0x40   : > { %p404_p2 = scmp.ne.s32.totalorder %s229_s21, %s403_s25  ;;  %s407_s27 = sshll.u32 %s498_s26, 4  ;;  %s408_s27 = int_to_ptr.vmem [resolvable:$false] %s407_s27 }
  0x41   : > { %s409_s28 = scalar_lea.vmem %s408_s27, 256  ;;  %p410_p6 = scmp.lt.s32.totalorder %s229_s21, %s408_s27 }
  0x42   : > { %p405_p4 = pnand %p404_p2, %p558_p3  ;;  %p411_p7 = scmp.lt.s32.totalorder %s409_s28, %s403_s25 }
  0x44   : > { %p406_p5 = pneg %p405_p4  ;;  %p412_p8 = por %p411_p7, %p410_p6 }
  0x46   : > { %p413_p10 = pnand %p412_p8, %p406_p5 }
  0x48   : > { %416 = shalt.err (!%p413_p10)
}
  0x49   : > { %s417_s10 = scalar_lea.hbm %s226_s20, 128  ;;  %s421_s30 = scalar_lea.hbm %s642_s1, 256 }
  0x4a   : > { %p418_p11 = scmp.ne.s32.totalorder %s226_s20, %s417_s10  ;;  %p422_p0 = scmp.lt.s32.totalorder %s226_s20, %s642_s1 }
  0x4b   : > { %p423_p1 = scmp.lt.s32.totalorder %s421_s30, %s417_s10 }
  0x4c   : > { %p419_p12 = pnand %p418_p11, %p558_p3 }
  0x4d   : > { %p424_p2 = por %p423_p1, %p422_p0 }
  0x4e   : > { %p420_p13 = pneg %p419_p12 }
  0x50   : > { %p425_p4 = pnand %p424_p2, %p420_p13 }
  0x52   : > { %428 = shalt.err (!%p425_p4)
}
  0x53   : > { %331 = dma.vmem_to_hbm [thread:$0]  (%p558_p3), %s229_s21, 128, %s226_s20, %s213_s24  }
  0x54 PF: > { %p337_p5 = scmp.ge.s32.totalorder %s495_s13, 2  ;;  %s240_s4 = sand.u32 1, %s467_s6  }
  0x55   : > { %s241_s5 = scalar_lea.sflag [#allocation3], %s240_s4 }
  0x56   : > { %p334_p6 = pnand %p337_p5, %p568_p9 }
  0x58   : > { %p335_p7 = pneg %p334_p6 }
  0x5a   : > { %462 = dma.done.wait (%p335_p7), %s241_s5, 128  }
  0x5b   : > { %464 = vsyncadd (%p335_p7), %s241_s5, 4294967168  ;;  %s14_s13 = sadd.s32 1, %s495_s13   ;;  %s645_s6 = smov %s471_s7 }
  0x5c   : > { %p11_p8 = scmp.ge.s32.totalorder %s14_s13, 6   ;;  %s646_s7 = smov %s475_s8 }
  0x5d   : > { %s647_s8 = smov %s576_s22  ;;  %s648_s9 = smov %s487_s11 }
  0x5e   : > { %s649_s10 = smov %s491_s12  ;;  %s650_s11 = smov %s653_s16 }
  0x5f   : > { %s651_s12 = smov %s657_s17  ;;  %13 = sbr.rel (!%p11_p8) target bundleno = 5 (0x5), region = 71 }
  0x64   :  { %246 = vsyncpa [#allocation3], 1 }
  0x65   :  { %248 = vsyncpa [#allocation3 + $0x1], 1 }

</bundles_post_ra>
